<compile_context>
chip_gen: v6e
topology: v6e:2x2x1
jax: 0.10.0
libtpu: 0.0.40
codegen_flags: <defaults>
</compile_context>

<pallas_src>
import functools

import jax
import jax.numpy as jnp
from jax.experimental import pallas as pl
from jax.experimental.pallas import tpu as pltpu


def _bert_self_output_kernel(x_ref, r_ref, w_ref, b_ref, g_ref, beta_ref,
                             o_ref, *, eps, matmul_dtype):
    # x_ref: (TM, H)  r_ref: (TM, H)  w_ref: (H, H) in matmul_dtype
    # b_ref / g_ref / beta_ref: (1, H), pre-cast to f32 in the wrapper.
    x = x_ref[...]
    if x.dtype != matmul_dtype:
        # In-kernel cast: hides under the MXU, avoids a wrapper-side
        # read-f32 + write-bf16 + re-read round trip through HBM.
        x = x.astype(matmul_dtype)
    # Dense layer on the MXU, accumulate in f32.
    y = jnp.dot(x, w_ref[...], preferred_element_type=jnp.float32)
    y = y + b_ref[...]
    y = y + r_ref[...].astype(jnp.float32)            # residual add (f32)
    # LayerNorm over the hidden dimension, in f32 (two-pass variance for
    # numerical robustness; rsqrt goes to the EUP slot).
    mean = jnp.mean(y, axis=-1, keepdims=True)
    centered = y - mean
    var = jnp.mean(centered * centered, axis=-1, keepdims=True)
    inv = jax.lax.rsqrt(var + eps)
    o_ref[...] = (centered * inv * g_ref[...] + beta_ref[...]).astype(o_ref.dtype)


def _round_up(x, m):
    return ((x + m - 1) // m) * m


def _vmem_plan():
    """Returns (scoped vmem_limit_bytes, byte budget for tile selection)."""
    try:
        phys = int(pltpu.get_tpu_info().vmem_capacity_bytes)
        if phys <= 0:
            raise ValueError
    except Exception:
        phys = 64 * 1024 * 1024  # conservative (v7x per-TC) if query unavailable
    # ~3/4 of physical, capped at 96 MiB: ~48 MiB on v7x (64 MiB physical),
    # ~96 MiB on v5e/v6e (128 MiB).  Leaves headroom for compiler scratch.
    vmem_limit = max(32 * 1024 * 1024, min(3 * phys // 4, 96 * 1024 * 1024))
    budget = int(vmem_limit * 0.85)
    return vmem_limit, budget


def _pick_tile_m(M, H, x_bytes, r_bytes, o_bytes, w_bytes, budget):
    # Small problems: one tile, one grid step (no pointless pipelining tax).
    if M <= 512:
        return _round_up(M, 8)

    def footprint(tm):
        streamed = 2 * tm * H * (x_bytes + r_bytes + o_bytes)   # double-buffered
        resident = H * H * w_bytes + 3 * H * 4                  # weight + LN params
        epilogue = 3 * tm * H * 4                               # f32 temporaries
        return streamed + resident + epilogue

    # Multiples of 256 feed the 2x256x256 MXU (v6e/v7x) with full tiles;
    # 384/640/1280 are still multiples of 128 for v5e's 4x128x128 MXU.
    candidates = [2048, 1536, 1280, 1024, 768, 640, 512, 384, 256, 128]
    fitting = [c for c in candidates if c <= M and footprint(c) <= budget]
    if not fitting:
        return 128 if M >= 128 else _round_up(M, 8)
    best = fitting[0]
    # Prefer a tile that divides M (no masked boundary block) as long as it is
    # not much smaller than the largest fitting tile.
    for c in fitting:
        if c < best // 2:
            break
        if M % c == 0:
            return c
    return best


def bert_self_output(hidden_states, input_tensor, weight, bias, ln_gamma,
                     ln_beta, *, eps=1e-12, tile_m=None,
                     matmul_dtype=jnp.bfloat16):
    """hidden_states, input_tensor: [B, S, H]; weight: [H_in, H_out] = [H, H];
    bias, ln_gamma, ln_beta: [H]  ->  [B, S, H] (dtype of hidden_states)."""
    B, S, H = hidden_states.shape
    assert input_tensor.shape == (B, S, H)
    assert weight.shape == (H, H)
    M = B * S
    matmul_dtype = jnp.dtype(matmul_dtype)
    out_dtype = hidden_states.dtype

    x2d = hidden_states.reshape(M, H)
    r2d = input_tensor.reshape(M, H)

    # Weight cast: one-time, outside the kernel.  In a real model this would
    # be done once at load time rather than per call.
    w = weight if weight.dtype == matmul_dtype else weight.astype(matmul_dtype)

    # Hoisted parameter casts: done once here, not re-emitted per grid step.
    b2d = bias.astype(jnp.float32).reshape(1, H)
    g2d = ln_gamma.astype(jnp.float32).reshape(1, H)
    be2d = ln_beta.astype(jnp.float32).reshape(1, H)

    vmem_limit, budget = _vmem_plan()
    if tile_m is None:
        tile_m = _pick_tile_m(M, H,
                              x2d.dtype.itemsize, r2d.dtype.itemsize,
                              jnp.dtype(out_dtype).itemsize,
                              matmul_dtype.itemsize, budget)
    tile_m = max(8, min(int(tile_m), _round_up(M, 8)))
    n_tiles = pl.cdiv(M, tile_m)   # partial last tile -> masked boundary block

    # Weight / bias / LN params never change across grid steps -> single
    # buffer, so the resident weight isn't pointlessly double-buffered in VMEM
    # (matters most on v7x's 64 MiB).
    resident = dict(pipeline_mode=pl.Buffered(1))

    out2d = pl.pallas_call(
        functools.partial(_bert_self_output_kernel, eps=float(eps),
                          matmul_dtype=matmul_dtype),
        out_shape=jax.ShapeDtypeStruct((M, H), out_dtype),
        grid_spec=pltpu.PrefetchScalarGridSpec(
            num_scalar_prefetch=0,
            grid=(n_tiles,),
            in_specs=[
                pl.BlockSpec((tile_m, H), lambda i: (i, 0)),          # x (streamed)
                pl.BlockSpec((tile_m, H), lambda i: (i, 0)),          # residual
                pl.BlockSpec((H, H), lambda i: (0, 0), **resident),   # weight
                pl.BlockSpec((1, H), lambda i: (0, 0), **resident),   # bias
                pl.BlockSpec((1, H), lambda i: (0, 0), **resident),   # LN gamma
                pl.BlockSpec((1, H), lambda i: (0, 0), **resident),   # LN beta
            ],
            out_specs=pl.BlockSpec((tile_m, H), lambda i: (i, 0)),
        ),
        compiler_params=pltpu.CompilerParams(
            dimension_semantics=("parallel",),
            vmem_limit_bytes=vmem_limit,
        ),
    )(x2d, r2d, w, b2d, g2d, be2d)

    return out2d.reshape(B, S, H)


def _reference(x, resid, w, b, gamma, beta, eps):
    B, S, H = x.shape
    xf = x.astype(jnp.float32).reshape(-1, H)
    rf = resid.astype(jnp.float32).reshape(-1, H)
    y = xf @ w.astype(jnp.float32) + b.astype(jnp.float32) + rf
    mu = y.mean(-1, keepdims=True)
    var = ((y - mu) ** 2).mean(-1, keepdims=True)
    o = ((y - mu) / jnp.sqrt(var + eps)) * gamma.astype(jnp.float32) \
        + beta.astype(jnp.float32)
    return o.reshape(B, S, H)


if __name__ == "__main__":
    # Small BERT-like config: hidden_size=32, layer_norm_eps=1e-12.
    batch, seq, hidden = 2, 8, 32
    eps = 1e-12

    key = jax.random.PRNGKey(0)
    k_x, k_r, k_w, k_b, k_g, k_be = jax.random.split(key, 6)

    x = jax.random.normal(k_x, (batch, seq, hidden), dtype=jnp.float32)
    resid = jax.random.normal(k_r, (batch, seq, hidden), dtype=jnp.float32)
    # Deterministic synthetic params; weight is [H_in, H_out] (i.e. torch W^T).
    w = jax.random.normal(k_w, (hidden, hidden), dtype=jnp.float32) * 0.02
    b = jax.random.normal(k_b, (hidden,), dtype=jnp.float32) * 0.02
    gamma = 1.0 + 0.1 * jax.random.normal(k_g, (hidden,), dtype=jnp.float32)
    beta = 0.1 * jax.random.normal(k_be, (hidden,), dtype=jnp.float32)

    ref = _reference(x, resid, w, b, gamma, beta, eps)

    # 1) Default path: bf16 matmul inputs, f32 accumulation + LayerNorm.
    out = jax.block_until_ready(
        bert_self_output(x, resid, w, b, gamma, beta, eps=eps))
    assert out.shape == (batch, seq, hidden)
    assert jnp.allclose(out, ref, atol=3e-2, rtol=3e-2)

    # 2) f32 matmul path: tight tolerance against the f32 reference.
    out_f32 = jax.block_until_ready(
        bert_self_output(x, resid, w, b, gamma, beta, eps=eps,
                         matmul_dtype=jnp.float32))
    assert jnp.allclose(out_f32, ref, atol=1e-5, rtol=1e-5)

    # 3) Multi-step grid with a masked boundary block (tile does not divide M)
    #    and an all-bf16 byte path (bf16 activations/residual -> bf16 output).
    b2, s2, h2 = 2, 72, 128   # M = 144, tile_m = 64 -> grid of 3, last partial
    k2x, k2r, k2w = jax.random.split(jax.random.PRNGKey(1), 3)
    x2 = jax.random.normal(k2x, (b2, s2, h2), dtype=jnp.bfloat16)
    r2 = jax.random.normal(k2r, (b2, s2, h2), dtype=jnp.bfloat16)
    w2 = (jax.random.normal(k2w, (h2, h2), dtype=jnp.float32) * 0.02
          ).astype(jnp.bfloat16)
    b2v = 0.01 * jnp.ones((h2,), jnp.float32)
    g2 = jnp.ones((h2,), jnp.float32)
    be2 = jnp.zeros((h2,), jnp.float32)
    out2 = jax.block_until_ready(
        bert_self_output(x2, r2, w2, b2v, g2, be2, eps=eps, tile_m=64))
    ref2 = _reference(x2, r2, w2, b2v, g2, be2, eps)
    assert out2.shape == (b2, s2, h2)
    assert out2.dtype == jnp.bfloat16
    assert jnp.allclose(out2.astype(jnp.float32), ref2, atol=7e-2, rtol=7e-2)

    print("KERNEL_OK")
</pallas_src>

<mosaic_0001>
module attributes {stable_mosaic.version = 11 : i64} {
  func.func @_bert_self_output_kernel(%arg0: i32, %arg1: memref<16x32xf32, #tpu.memory_space<vmem>>, %arg2: memref<16x32xf32, #tpu.memory_space<vmem>>, %arg3: memref<32x32xbf16, #tpu.memory_space<vmem>>, %arg4: memref<1x32xf32, #tpu.memory_space<vmem>>, %arg5: memref<1x32xf32, #tpu.memory_space<vmem>>, %arg6: memref<1x32xf32, #tpu.memory_space<vmem>>, %arg7: memref<16x32xf32, #tpu.memory_space<vmem>>) attributes {dimension_semantics = [#tpu.dimension_semantics<parallel>], iteration_bounds = array<i64: 1>, scalar_prefetch = 0 : i64, scratch_operands = 0 : i64, tpu.core_type = #tpu.core_type<tc>, window_params = [{transform_indices = @transform_0, window_bounds = array<i64: 16, 32>}, {transform_indices = @transform_1, window_bounds = array<i64: 16, 32>}, {pipeline_mode = #tpu.pipeline_mode<synchronous>, transform_indices = @transform_2, window_bounds = array<i64: 32, 32>}, {pipeline_mode = #tpu.pipeline_mode<synchronous>, transform_indices = @transform_3, window_bounds = array<i64: 1, 32>}, {pipeline_mode = #tpu.pipeline_mode<synchronous>, transform_indices = @transform_4, window_bounds = array<i64: 1, 32>}, {pipeline_mode = #tpu.pipeline_mode<synchronous>, transform_indices = @transform_5, window_bounds = array<i64: 1, 32>}, {transform_indices = @transform_6, window_bounds = array<i64: 16, 32>}]} {
    %c0 = arith.constant 0 : index
    %c0_0 = arith.constant 0 : index
    %0 = vector.load %arg1[%c0, %c0_0] : memref<16x32xf32, #tpu.memory_space<vmem>>, vector<16x32xf32>
    %1 = arith.truncf %0 : vector<16x32xf32> to vector<16x32xbf16>
    %c0_1 = arith.constant 0 : index
    %c0_2 = arith.constant 0 : index
    %2 = vector.load %arg3[%c0_1, %c0_2] : memref<32x32xbf16, #tpu.memory_space<vmem>>, vector<32x32xbf16>
    %cst = arith.constant dense<0.000000e+00> : vector<16x32xf32>
    %3 = tpu.matmul %1, %2, %cst {dimension_numbers = #tpu.dot_dimension_numbers<[1], [0], [0], [1], [0, 0, 1, 1], [], []>} : vector<16x32xbf16>, vector<32x32xbf16>, vector<16x32xf32> -> vector<16x32xf32>
    %c0_3 = arith.constant 0 : index
    %c0_4 = arith.constant 0 : index
    %4 = vector.load %arg4[%c0_3, %c0_4] : memref<1x32xf32, #tpu.memory_space<vmem>>, vector<1x32xf32>
    %5 = vector.broadcast %4 : vector<1x32xf32> to vector<16x32xf32>
    %6 = arith.addf %3, %5 : vector<16x32xf32>
    %c0_5 = arith.constant 0 : index
    %c0_6 = arith.constant 0 : index
    %7 = vector.load %arg2[%c0_5, %c0_6] : memref<16x32xf32, #tpu.memory_space<vmem>>, vector<16x32xf32>
    %8 = arith.addf %6, %7 : vector<16x32xf32>
    %cst_7 = arith.constant dense<0.000000e+00> : vector<16xf32>
    %9 = vector.multi_reduction <add>, %8, %cst_7 [1] : vector<16x32xf32> to vector<16xf32>
    %10 = vector.shape_cast %9 : vector<16xf32> to vector<16x1xf32>
    %cst_8 = arith.constant 3.200000e+01 : f32
    %11 = vector.broadcast %cst_8 : f32 to vector<16x1xf32>
    %12 = arith.divf %10, %11 : vector<16x1xf32>
    %13 = vector.broadcast %12 : vector<16x1xf32> to vector<16x32xf32>
    %14 = arith.subf %8, %13 : vector<16x32xf32>
    %15 = arith.mulf %14, %14 : vector<16x32xf32>
    %cst_9 = arith.constant dense<0.000000e+00> : vector<16xf32>
    %16 = vector.multi_reduction <add>, %15, %cst_9 [1] : vector<16x32xf32> to vector<16xf32>
    %17 = vector.shape_cast %16 : vector<16xf32> to vector<16x1xf32>
    %cst_10 = arith.constant 3.200000e+01 : f32
    %18 = vector.broadcast %cst_10 : f32 to vector<16x1xf32>
    %19 = arith.divf %17, %18 : vector<16x1xf32>
    %cst_11 = arith.constant 9.99999996E-13 : f32
    %20 = vector.broadcast %cst_11 : f32 to vector<16x1xf32>
    %21 = arith.addf %19, %20 : vector<16x1xf32>
    %22 = math.rsqrt %21 : vector<16x1xf32>
    %23 = vector.broadcast %22 : vector<16x1xf32> to vector<16x32xf32>
    %24 = arith.mulf %14, %23 : vector<16x32xf32>
    %c0_12 = arith.constant 0 : index
    %c0_13 = arith.constant 0 : index
    %25 = vector.load %arg5[%c0_12, %c0_13] : memref<1x32xf32, #tpu.memory_space<vmem>>, vector<1x32xf32>
    %26 = vector.broadcast %25 : vector<1x32xf32> to vector<16x32xf32>
    %27 = arith.mulf %24, %26 : vector<16x32xf32>
    %c0_14 = arith.constant 0 : index
    %c0_15 = arith.constant 0 : index
    %28 = vector.load %arg6[%c0_14, %c0_15] : memref<1x32xf32, #tpu.memory_space<vmem>>, vector<1x32xf32>
    %29 = vector.broadcast %28 : vector<1x32xf32> to vector<16x32xf32>
    %30 = arith.addf %27, %29 : vector<16x32xf32>
    %c0_16 = arith.constant 0 : index
    %c0_17 = arith.constant 0 : index
    %31 = vector.load %arg7[%c0_16, %c0_17] : memref<16x32xf32, #tpu.memory_space<vmem>>, vector<16x32xf32>
    tpu.vector_store %arg7[%c0_16, %c0_17], %30 {strides = array<i32>} : memref<16x32xf32, #tpu.memory_space<vmem>>, vector<16x32xf32>,
    return
  }
  func.func @transform_0(%arg0: i32) -> (i32, i32) {
    %c0_i32 = arith.constant 0 : i32
    %c0_i32_0 = arith.constant 0 : i32
    return %arg0, %c0_i32 : i32, i32
  }
  func.func @transform_1(%arg0: i32) -> (i32, i32) {
    %c0_i32 = arith.constant 0 : i32
    %c0_i32_0 = arith.constant 0 : i32
    return %arg0, %c0_i32 : i32, i32
  }
  func.func @transform_2(%arg0: i32) -> (i32, i32) {
    %c0_i32 = arith.constant 0 : i32
    %c0_i32_0 = arith.constant 0 : i32
    %c0_i32_1 = arith.constant 0 : i32
    return %c0_i32, %c0_i32_0 : i32, i32
  }
  func.func @transform_3(%arg0: i32) -> (i32, i32) {
    %c0_i32 = arith.constant 0 : i32
    %c0_i32_0 = arith.constant 0 : i32
    %c0_i32_1 = arith.constant 0 : i32
    return %c0_i32, %c0_i32_0 : i32, i32
  }
  func.func @transform_4(%arg0: i32) -> (i32, i32) {
    %c0_i32 = arith.constant 0 : i32
    %c0_i32_0 = arith.constant 0 : i32
    %c0_i32_1 = arith.constant 0 : i32
    return %c0_i32, %c0_i32_0 : i32, i32
  }
  func.func @transform_5(%arg0: i32) -> (i32, i32) {
    %c0_i32 = arith.constant 0 : i32
    %c0_i32_0 = arith.constant 0 : i32
    %c0_i32_1 = arith.constant 0 : i32
    return %c0_i32, %c0_i32_0 : i32, i32
  }
  func.func @transform_6(%arg0: i32) -> (i32, i32) {
    %c0_i32 = arith.constant 0 : i32
    %c0_i32_0 = arith.constant 0 : i32
    return %arg0, %c0_i32 : i32, i32
  }
}

</mosaic_0001>

<bundles_post_ra>
// kernel: tpu_custom_call.1
= control target key start
LH: loop header
LB: loop body
LE: loop exit
PB: predicated region body
PF: predicated region fallthrough
CT: control target
= control target key end

     0   :  { %11 = vsyncpa [#allocation3], 0  ;;  %s407_s0 = inlined_call_operand.hbm [shape: f32[16,32], index: 0, kind: input, shape index: {}]   ;;  %s408_s1 = inlined_call_operand.hbm [shape: f32[16,32], index: 1, kind: input, shape index: {}]   ;;  %s409_s2 = inlined_call_operand.hbm [shape: bf16[32,32], index: 2, kind: input, shape index: {}]   ;;  %s410_s3 = inlined_call_operand.vmem [shape: f32[1,32], index: 3, kind: input, shape index: {}]   ;;  %s411_s4 = inlined_call_operand.vmem [shape: f32[1,32], index: 4, kind: input, shape index: {}]   ;;  %s412_s5 = inlined_call_operand.vmem [shape: f32[1,32], index: 5, kind: input, shape index: {}]   ;;  %s413_s6 = inlined_call_operand.hbm [shape: f32[16,32], index: 6, kind: output, shape index: {}]  }
   0x1   :  { %12 = vsyncpa [#allocation6], 0 }
   0x2   :  { %13 = vsyncpa [#allocation4], 0  ;;  %s325_s21 = smov [#allocation5]   ;;  %s326_s23 = smov [#allocation2]  }
   0x3   :  { %s31_s22 = sshll.u32 %s325_s21, 4  ;;  %s19_s24 = sshll.u32 %s326_s23, 4  ;;  %s32_s22 = int_to_ptr.vmem [resolvable:$true] %s31_s22  ;;  %s20_s24 = int_to_ptr.vmem [resolvable:$true] %s19_s24 }
   0x4   :  { %s247_s25 = scalar_lea.vmem %s32_s22, 256  ;;  %p252_p1 = scmp.lt.s32.totalorder %s32_s22, %s32_s22 }
   0x5   :  { %p248_p0 = scmp.ne.s32.totalorder %s32_s22, %s247_s25  ;;  %p253_p2 = scmp.lt.s32.totalorder %s247_s25, %s247_s25 }
   0x7   :  { %p254_p3 = por %p253_p2, %p252_p1 }
   0x9   :  { %p255_p4 = pnand %p254_p3, %p248_p0 }
   0xb   :  { %258 = shalt.err (!%p255_p4)
}
   0xc   :  { %s327_s26 = smov 128   ;;  %s328_s27 = smov 8  }
   0xd   :  { %37 = dma.hbm_to_vmem [thread:$0]  %s408_s1, 256, %s32_s22, [#allocation6], %s327_s26, %s327_s26, %s328_s27  }
   0xe   :  { %s267_s30 = scalar_lea.vmem %s20_s24, 256  ;;  %p272_p6 = scmp.lt.s32.totalorder %s20_s24, %s20_s24 }
   0xf   :  { %p268_p5 = scmp.ne.s32.totalorder %s20_s24, %s267_s30  ;;  %p273_p7 = scmp.lt.s32.totalorder %s267_s30, %s267_s30 }
  0x11   :  { %p274_p8 = por %p273_p7, %p272_p6 }
  0x13   :  { %p275_p9 = pnand %p274_p8, %p268_p5 }
  0x15   :  { %278 = shalt.err (!%p275_p9)
}
  0x16   :  { %25 = dma.hbm_to_vmem [thread:$0]  %s407_s0, 256, %s20_s24, [#allocation3], %s327_s26, %s327_s26, %s328_s27  }
  0x17   :  { %s329_s9 = smov [#allocation7]  }
  0x18   :  { %s43_s10 = sshll.u32 %s329_s9, 4  ;;  %s44_s10 = int_to_ptr.vmem [resolvable:$true] %s43_s10 }
  0x19   :  { %s287_s11 = scalar_lea.vmem %s44_s10, 256  ;;  %p292_p11 = scmp.lt.s32.totalorder %s44_s10, %s44_s10 }
  0x1a   :  { %p288_p10 = scmp.ne.s32.totalorder %s44_s10, %s287_s11  ;;  %p293_p12 = scmp.lt.s32.totalorder %s287_s11, %s287_s11 }
  0x1c   :  { %p294_p13 = por %p293_p12, %p292_p11 }
  0x1e   :  { %p295_p0 = pnand %p294_p13, %p288_p10 }
  0x20   :  { %298 = shalt.err (!%p295_p0)
}
  0x21   :  { %s330_s1 = smov 64   ;;  %s331_s12 = smov 4  }
  0x22   :  { %49 = dma.hbm_to_vmem [thread:$0]  %s409_s2, 256, %s44_s10, [#allocation6], %s330_s1, %s330_s1, %s331_s12  }
  0x23   :  { %319 = dma.done.wait [#allocation3], 256  }
  0x24   :  { %320 = vsyncadd [#allocation3], 4294967040 }
  0x25   :  { %321 = dma.done.wait [#allocation6], 512  }
  0x26   :  { %322 = vsyncadd [#allocation6], 4294966784  ;;  %v332_v0 = vmov 0.0   ;;  %vm333_vm0 = vmmov 0   ;;  %v233_v1 = vld [vmem:[#allocation7 + $0x8] sm:$0xff]   ;;  %v234_v2 = vld [vmem:[#allocation7] sm:$0xff]  }
  0x27   :  { %215 = vmatprep.subr.bf16.mxu0 %v332_v0  ;;  %219 = vmatprep.mubr.msk.bf16.mxu0 %vm333_vm0, %v332_v0  ;;  %v66_v3 = vld [vmem:[#allocation2] sm:$0xff]  ;;  %v67_v4 = vld [vmem:[#allocation2 + $0x8] sm:$0xff]  ;;  %vm92_vm1 = vcmask 261120   ;;  %v137_v8 = vld [vmem:[#allocation5] sm:$0xff]  ;;  %s334_s18 = smov [#allocation8]  }
  0x28   :  { %216 = vmatpush3.bf16.msra.mxu0 %v233_v1  ;;  %v68_v5 = vpack.c.bf16 %v67_v4, %v66_v3  ;;  %v206_v6 = vld [vmem:[%s410_s3] ss:$0 sm:$0xff]  ;;  %v138_v13 = vld [vmem:[#allocation5 + $0x8] sm:$0xff]  ;;  %s193_s19 = sshll.u32 %s334_s18, 4  ;;  %s194_s19 = int_to_ptr.vmem [resolvable:$true] %s193_s19 }
  0x29   :  { %217 = vmatprep.subr.bf16.mxu0 %v332_v0  ;;  %v210_v36 = vld [vmem:[%s411_s4] ss:$0 sm:$0xff]  ;;  %s299_s20 = scalar_lea.vmem %s194_s19, 256  ;;  %p304_p2 = scmp.lt.s32.totalorder %s194_s19, %s194_s19 }
  0x2a   :  { %v211_v38 = vld [vmem:[%s412_s5] ss:$0 sm:$0xff]  ;;  %p300_p1 = scmp.ne.s32.totalorder %s194_s19, %s299_s20  ;;  %p305_p3 = scmp.lt.s32.totalorder %s299_s20, %s299_s20 }
  0x2c   :  { %218 = vmatpush3.bf16.msra.mxu0 %v234_v2  ;;  %p306_p4 = por %p305_p3, %p304_p2 }
  0x2e   :  { %p307_p5 = pnand %p306_p4, %p300_p1 }
  0x2f   :  { %220 = vmatmul.mubr.msk.bf16.vlgmr.msra.gmra.mxu0 %vm92_vm1, %v68_v5 }
  0xef   :  { %v130_v7 = vpop.f32.mrf.mxu0 }
  0xf0   :  { %v131_v9 = vadd.f32 %v206_v6, %v130_v7 }
  0xf1   :  { %v221_v10 = vpop.f32.mrf.mxu0 }
  0xf2   :  { %v139_v11 = vadd.f32 %v137_v8, %v131_v9 }
  0xf3   :  { %v133_v12 = vpop.f32.mrf.mxu0 }
  0xf4   :  { %v134_v14 = vadd.f32 %v206_v6, %v133_v12  ;;  %v141_v15 = vsel %vm92_vm1, %v139_v11, 0.0 }
  0xf5   :  { %142 = vadd.xlane.f32.xlu0 %v141_v15  ;;  %v222_v16 = vpop.f32.mrf.mxu0 }
  0xf6   :  { %v140_v17 = vadd.f32 %v138_v13, %v134_v14 }
  0xf8   :  { %v144_v18 = vsel %vm92_vm1, %v140_v17, 0.0 }
  0xf9   :  { %145 = vadd.xlane.f32.xlu0 %v144_v18 }
 0x17e   :  { %v143_v19 = vpop.xlane.xlu0 %142 }
 0x17f   :  { %v148_v20 = vmul.f32 0.03125, %v143_v19 }
 0x181   :  { %v150_v21 = vsub.f32 %v139_v11, %v148_v20 }
 0x182   :  { %v146_v22 = vpop.xlane.xlu0 %145 }
 0x183   :  { %v149_v23 = vmul.f32 0.03125, %v146_v22  ;;  %v152_v24 = vmul.f32 %v150_v21, %v150_v21 }
 0x185   :  { %v151_v25 = vsub.f32 %v140_v17, %v149_v23  ;;  %v154_v26 = vsel %vm92_vm1, %v152_v24, 0.0 }
 0x186   :  { %155 = vadd.xlane.f32.xlu1 %v154_v26 }
 0x187   :  { %v153_v27 = vmul.f32 %v151_v25, %v151_v25 }
 0x189   :  { %v157_v28 = vsel %vm92_vm1, %v153_v27, 0.0 }
 0x18a   :  { %158 = vadd.xlane.f32.xlu1 %v157_v28 }
 0x20f   :  { %v156_v29 = vpop.xlane.xlu1 %155 }
 0x210   :  { %v160_v30 = vmul.f32 0.03125, %v156_v29 }
 0x212   :  { %v162_v31 = vadd.f32 1e-12, %v160_v30 }
 0x213   :  { %v159_v32 = vpop.xlane.xlu1 %158 }
 0x214   :  { %235 = vrsqrt.f32 %v162_v31  ;;  %v161_v33 = vmul.f32 0.03125, %v159_v32 }
 0x216   :  { %v163_v34 = vadd.f32 1e-12, %v161_v33 }
 0x218   :  { %237 = vrsqrt.f32 %v163_v34 }
 0x221   :  { %v236_v35 = vpop.eup %235 }
 0x222   :  { %v166_v37 = vmul.f32 %v236_v35, %v150_v21 }
 0x224   :  { %v175_v39 = vmul.f32 %v210_v36, %v166_v37 }
 0x225   :  { %v238_v40 = vpop.eup %237 }
 0x226   :  { %v167_v41 = vmul.f32 %v238_v40, %v151_v25  ;;  %v184_v42 = vadd.f32 %v211_v38, %v175_v39 }
 0x228   :  { %v176_v43 = vmul.f32 %v210_v36, %v167_v41  ;;  %186 = vst.msk [vmem:[#allocation8] sm:$0xff] %vm92_vm1, %v184_v42 }
 0x22a   :  { %v185_v44 = vadd.f32 %v211_v38, %v176_v43 }
 0x22c   :  { %187 = vst.msk [vmem:[#allocation8 + $0x8] sm:$0xff] %vm92_vm1, %v185_v44 }
 0x22d   :  { %310 = shalt.err (!%p307_p5)
}
 0x22e   :  { %199 = dma.vmem_to_hbm [thread:$0]  %s194_s19, 256, %s413_s6, [#allocation4], %s327_s26, %s327_s26, %s328_s27  }
 0x22f   :  { %323 = dma.done.wait [#allocation4], 256  }
 0x230   :  { %324 = vsyncadd [#allocation4], 4294967040 }
 0x231   :  { %203 = vsyncpa [#allocation3], 1 }
 0x232   :  { %204 = vsyncpa [#allocation6], 1 }
 0x233   :  { %205 = vsyncpa [#allocation4], 1 }

</bundles_post_ra>
